<compile_context>
chip_gen: v7x
topology: tpu7x:2x2x1
jax: 0.10.0
libtpu: 0.0.40
codegen_flags: <defaults>
</compile_context>

<pallas_src>
import jax
import jax.numpy as jnp
from jax import lax
from jax.experimental import pallas as pl
from jax.experimental.pallas import tpu as pltpu

_LANE = 128     # vreg lane width
_SUBLANE = 8    # f32 sublane width


def _round_up(n, m):
    return ((n + m - 1) // m) * m


def _mlp_kernel(x_ref, w1_ref, b1_ref, w2_ref, b2_ref, o_ref):
    # fc1: (TM, IN_P) @ (IN_P, H_P) on the MXU — bf16 operands, f32 accumulate.
    x = x_ref[...].astype(w1_ref.dtype)
    h = jnp.dot(x, w1_ref[...], preferred_element_type=jnp.float32)
    h = h + b1_ref[...]
    # Exact (erf-based) GELU in f32 — matches torch.nn.GELU() default.
    h = 0.5 * h * (1.0 + lax.erf(h * jnp.float32(0.7071067811865476)))
    # dropout(p=0.0) -> identity (no-op)
    # fc2: (TM, H_P) @ (H_P, OUT_P) — bf16 operands, f32 accumulate.
    o = jnp.dot(h.astype(w2_ref.dtype), w2_ref[...],
                preferred_element_type=jnp.float32)
    o = o + b2_ref[...]
    # dropout(p=0.0) -> identity (no-op)
    o_ref[...] = o.astype(o_ref.dtype)   # lane-dense (OUT_P multiple of 128)


def prepare_params(w1, b1, w2, b2, *, matmul_dtype=jnp.bfloat16):
    """One-time parameter prep, hoisted out of the forward hot path.

    torch layout W=(out, in) -> matmul layout (in, out); every feature dim is
    zero-padded to the 128-lane vreg width (lane-dense MXU feeds and stores);
    matmul operands are cast to bf16 (halves resident-weight VMEM and HBM
    traffic), biases stay f32 for an exact f32 epilogue.
    """
    hid, in_f = w1.shape
    out_f = w2.shape[0]
    in_p, h_p, out_p = (_round_up(d, _LANE) for d in (in_f, hid, out_f))

    w1_p = jnp.zeros((in_p, h_p), matmul_dtype)
    w1_p = w1_p.at[:in_f, :hid].set(w1.T.astype(matmul_dtype))
    b1_p = jnp.zeros((1, h_p), jnp.float32)
    b1_p = b1_p.at[0, :hid].set(b1.astype(jnp.float32))

    w2_p = jnp.zeros((h_p, out_p), matmul_dtype)
    w2_p = w2_p.at[:hid, :out_f].set(w2.T.astype(matmul_dtype))
    b2_p = jnp.zeros((1, out_p), jnp.float32)
    b2_p = b2_p.at[0, :out_f].set(b2.astype(jnp.float32))

    return (w1_p, b1_p, w2_p, b2_p), (in_f, hid, out_f)


def mlp_forward(x, prepared, *, block_m=256):
    """x: (B, in_features) f32; prepared: output of prepare_params."""
    (w1_p, b1_p, w2_p, b2_p), (in_f, hid, out_f) = prepared
    B, xin = x.shape
    assert xin == in_f, (xin, in_f)
    in_p, h_p = w1_p.shape
    out_p = w2_p.shape[1]

    # Batch tile: multiple of the f32 sublane width, capped at block_m so the
    # (TM, H_P) f32 intermediate and double-buffered x/out tiles stay well
    # inside VMEM (re-derived per call; v7x has only 64 MiB VMEM per TC).
    tm = min(block_m, _round_up(B, _SUBLANE))
    b_p = _round_up(B, tm)
    grid = (b_p // tm,)

    # Zero-pad batch/features; padding contributes nothing to the matmuls.
    x_p = jnp.zeros((b_p, in_p), x.dtype).at[:B, :in_f].set(x)

    # VMEM budget: resident weights + biases + double-buffered x/out tiles +
    # the f32 (TM, H_P) intermediate, with 2x headroom (clamped to 16..64 MiB).
    itm = jnp.dtype(x.dtype).itemsize
    w_bytes = w1_p.size * w1_p.dtype.itemsize + w2_p.size * w2_p.dtype.itemsize
    b_bytes = (b1_p.size + b2_p.size) * 4
    io_bytes = 2 * tm * (in_p + out_p) * itm
    interm_bytes = tm * h_p * 4
    vmem_limit = int(min(64 * 1024 * 1024,
                         max(2 * (w_bytes + b_bytes + io_bytes + interm_bytes),
                             16 * 1024 * 1024)))

    cost = pl.CostEstimate(
        flops=2 * b_p * (in_p * h_p + h_p * out_p),
        transcendentals=b_p * h_p,                      # erf in the GELU
        bytes_accessed=int(x_p.size * itm + w_bytes + b_bytes
                           + b_p * out_p * itm),
    )

    out2d = pl.pallas_call(
        _mlp_kernel,
        out_shape=jax.ShapeDtypeStruct((b_p, out_p), x.dtype),
        grid=grid,
        in_specs=[
            pl.BlockSpec((tm, in_p), lambda i: (i, 0)),     # x tile (pipelined)
            pl.BlockSpec((in_p, h_p), lambda i: (0, 0)),    # w1 (VMEM-resident)
            pl.BlockSpec((1, h_p), lambda i: (0, 0)),       # b1 (resident)
            pl.BlockSpec((h_p, out_p), lambda i: (0, 0)),   # w2 (resident)
            pl.BlockSpec((1, out_p), lambda i: (0, 0)),     # b2 (resident)
        ],
        out_specs=pl.BlockSpec((tm, out_p), lambda i: (i, 0)),  # lane-dense out
        compiler_params=pltpu.CompilerParams(
            dimension_semantics=("parallel",),
            vmem_limit_bytes=vmem_limit,
        ),
        cost_estimate=cost,
    )(x_p, w1_p, b1_p, w2_p, b2_p)

    # Strip padding; PyTorch `x.flatten(-2, -1)` on the 2D (B, out) result
    # yields a 1D (B*out,) tensor.
    return out2d[:B, :out_f].reshape(-1)


def reference_forward(x, w1, b1, w2, b2):
    h = x @ w1.T + b1
    h = jax.nn.gelu(h, approximate=False)
    o = h @ w2.T + b2
    return o.reshape(-1)


if __name__ == "__main__":
    key = jax.random.PRNGKey(0)
    batch = 8
    in_features = 32
    hidden_features = 64
    out_features = 16

    kx, k1, k2, k3, k4 = jax.random.split(key, 5)
    x = jax.random.normal(kx, (batch, in_features), dtype=jnp.float32)

    # Deterministic parameter init (torch nn.Linear shapes: W=(out, in), b=(out,))
    bound1 = 1.0 / jnp.sqrt(in_features)
    w1 = jax.random.uniform(k1, (hidden_features, in_features),
                            minval=-bound1, maxval=bound1, dtype=jnp.float32)
    b1 = jax.random.uniform(k2, (hidden_features,),
                            minval=-bound1, maxval=bound1, dtype=jnp.float32)
    bound2 = 1.0 / jnp.sqrt(hidden_features)
    w2 = jax.random.uniform(k3, (out_features, hidden_features),
                            minval=-bound2, maxval=bound2, dtype=jnp.float32)
    b2 = jax.random.uniform(k4, (out_features,),
                            minval=-bound2, maxval=bound2, dtype=jnp.float32)

    # One-time param prep (transpose + pad + bf16 cast), hoisted out of the
    # hot path; the forward itself is jitted (dims are static Python ints).
    params, dims = prepare_params(w1, b1, w2, b2)
    fwd = jax.jit(lambda xx, pp: mlp_forward(xx, (pp, dims)))

    out = jax.block_until_ready(fwd(x, params))

    ref = reference_forward(x, w1, b1, w2, b2)
    assert out.shape == (batch * out_features,), out.shape
    # bf16 MXU operands (f32 accumulation) -> looser tolerance vs pure-f32 ref.
    max_err = float(jnp.max(jnp.abs(out - ref)))
    assert jnp.allclose(out, ref, atol=3e-2, rtol=3e-2), max_err

    print("KERNEL_OK")
</pallas_src>

<mosaic_0001>
module attributes {stable_mosaic.version = 11 : i64} {
  func.func @_mlp_kernel(%arg0: i32, %arg1: memref<8x128xf32, #tpu.memory_space<vmem>>, %arg2: memref<128x128xbf16, #tpu.memory_space<vmem>>, %arg3: memref<1x128xf32, #tpu.memory_space<vmem>>, %arg4: memref<128x128xbf16, #tpu.memory_space<vmem>>, %arg5: memref<1x128xf32, #tpu.memory_space<vmem>>, %arg6: memref<8x128xf32, #tpu.memory_space<vmem>>) attributes {dimension_semantics = [#tpu.dimension_semantics<parallel>], iteration_bounds = array<i64: 1>, scalar_prefetch = 0 : i64, scratch_operands = 0 : i64, tpu.core_type = #tpu.core_type<tc>, window_params = [{transform_indices = @transform_0, window_bounds = array<i64: 8, 128>}, {pipeline_mode = #tpu.pipeline_mode<synchronous>, transform_indices = @transform_1, window_bounds = array<i64: 128, 128>}, {pipeline_mode = #tpu.pipeline_mode<synchronous>, transform_indices = @transform_2, window_bounds = array<i64: 1, 128>}, {pipeline_mode = #tpu.pipeline_mode<synchronous>, transform_indices = @transform_3, window_bounds = array<i64: 128, 128>}, {pipeline_mode = #tpu.pipeline_mode<synchronous>, transform_indices = @transform_4, window_bounds = array<i64: 1, 128>}, {transform_indices = @transform_5, window_bounds = array<i64: 8, 128>}]} {
    %c0 = arith.constant 0 : index
    %c0_0 = arith.constant 0 : index
    %0 = vector.load %arg1[%c0, %c0_0] : memref<8x128xf32, #tpu.memory_space<vmem>>, vector<8x128xf32>
    %1 = arith.truncf %0 : vector<8x128xf32> to vector<8x128xbf16>
    %c0_1 = arith.constant 0 : index
    %c0_2 = arith.constant 0 : index
    %2 = vector.load %arg2[%c0_1, %c0_2] : memref<128x128xbf16, #tpu.memory_space<vmem>>, vector<128x128xbf16>
    %cst = arith.constant dense<0.000000e+00> : vector<8x128xf32>
    %3 = tpu.matmul %1, %2, %cst {dimension_numbers = #tpu.dot_dimension_numbers<[1], [0], [0], [1], [0, 0, 1, 1], [], []>} : vector<8x128xbf16>, vector<128x128xbf16>, vector<8x128xf32> -> vector<8x128xf32>
    %c0_3 = arith.constant 0 : index
    %c0_4 = arith.constant 0 : index
    %4 = vector.load %arg3[%c0_3, %c0_4] : memref<1x128xf32, #tpu.memory_space<vmem>>, vector<1x128xf32>
    %5 = vector.broadcast %4 : vector<1x128xf32> to vector<8x128xf32>
    %6 = arith.addf %3, %5 : vector<8x128xf32>
    %cst_5 = arith.constant 5.000000e-01 : f32
    %7 = vector.broadcast %cst_5 : f32 to vector<8x128xf32>
    %8 = arith.mulf %7, %6 : vector<8x128xf32>
    %cst_6 = arith.constant 0.707106769 : f32
    %9 = vector.broadcast %cst_6 : f32 to vector<8x128xf32>
    %10 = arith.mulf %6, %9 : vector<8x128xf32>
    %11 = math.erf %10 : vector<8x128xf32>
    %cst_7 = arith.constant 1.000000e+00 : f32
    %12 = vector.broadcast %cst_7 : f32 to vector<8x128xf32>
    %13 = arith.addf %12, %11 : vector<8x128xf32>
    %14 = arith.mulf %8, %13 : vector<8x128xf32>
    %15 = arith.truncf %14 : vector<8x128xf32> to vector<8x128xbf16>
    %c0_8 = arith.constant 0 : index
    %c0_9 = arith.constant 0 : index
    %16 = vector.load %arg4[%c0_8, %c0_9] : memref<128x128xbf16, #tpu.memory_space<vmem>>, vector<128x128xbf16>
    %cst_10 = arith.constant dense<0.000000e+00> : vector<8x128xf32>
    %17 = tpu.matmul %15, %16, %cst_10 {dimension_numbers = #tpu.dot_dimension_numbers<[1], [0], [0], [1], [0, 0, 1, 1], [], []>} : vector<8x128xbf16>, vector<128x128xbf16>, vector<8x128xf32> -> vector<8x128xf32>
    %c0_11 = arith.constant 0 : index
    %c0_12 = arith.constant 0 : index
    %18 = vector.load %arg5[%c0_11, %c0_12] : memref<1x128xf32, #tpu.memory_space<vmem>>, vector<1x128xf32>
    %19 = vector.broadcast %18 : vector<1x128xf32> to vector<8x128xf32>
    %20 = arith.addf %17, %19 : vector<8x128xf32>
    %c0_13 = arith.constant 0 : index
    %c0_14 = arith.constant 0 : index
    %21 = vector.load %arg6[%c0_13, %c0_14] : memref<8x128xf32, #tpu.memory_space<vmem>>, vector<8x128xf32>
    tpu.vector_store %arg6[%c0_13, %c0_14], %20 {strides = array<i32>} : memref<8x128xf32, #tpu.memory_space<vmem>>, vector<8x128xf32>,
    return
  }
  func.func @transform_0(%arg0: i32) -> (i32, i32) {
    %c0_i32 = arith.constant 0 : i32
    %c0_i32_0 = arith.constant 0 : i32
    return %arg0, %c0_i32 : i32, i32
  }
  func.func @transform_1(%arg0: i32) -> (i32, i32) {
    %c0_i32 = arith.constant 0 : i32
    %c0_i32_0 = arith.constant 0 : i32
    %c0_i32_1 = arith.constant 0 : i32
    return %c0_i32, %c0_i32_0 : i32, i32
  }
  func.func @transform_2(%arg0: i32) -> (i32, i32) {
    %c0_i32 = arith.constant 0 : i32
    %c0_i32_0 = arith.constant 0 : i32
    %c0_i32_1 = arith.constant 0 : i32
    return %c0_i32, %c0_i32_0 : i32, i32
  }
  func.func @transform_3(%arg0: i32) -> (i32, i32) {
    %c0_i32 = arith.constant 0 : i32
    %c0_i32_0 = arith.constant 0 : i32
    %c0_i32_1 = arith.constant 0 : i32
    return %c0_i32, %c0_i32_0 : i32, i32
  }
  func.func @transform_4(%arg0: i32) -> (i32, i32) {
    %c0_i32 = arith.constant 0 : i32
    %c0_i32_0 = arith.constant 0 : i32
    %c0_i32_1 = arith.constant 0 : i32
    return %c0_i32, %c0_i32_0 : i32, i32
  }
  func.func @transform_5(%arg0: i32) -> (i32, i32) {
    %c0_i32 = arith.constant 0 : i32
    %c0_i32_0 = arith.constant 0 : i32
    return %arg0, %c0_i32 : i32, i32
  }
}

</mosaic_0001>

<bundles_post_ra>
// kernel: _lambda_.1
= control target key start
LH: loop header
LB: loop body
LE: loop exit
PB: predicated region body
PF: predicated region fallthrough
CT: control target
= control target key end

     0   :  { %10 = vsyncpa [#allocation3], 0  ;;  %s506_s0 = inlined_call_operand.vmem [shape: f32[8,128], index: 0, kind: input, shape index: {}]   ;;  %s507_s1 = inlined_call_operand.hbm [shape: bf16[128,128], index: 1, kind: input, shape index: {}]   ;;  %s508_s2 = inlined_call_operand.vmem [shape: f32[1,128], index: 2, kind: input, shape index: {}]   ;;  %s509_s3 = inlined_call_operand.hbm [shape: bf16[128,128], index: 3, kind: input, shape index: {}]   ;;  %s510_s4 = inlined_call_operand.vmem [shape: f32[1,128], index: 4, kind: input, shape index: {}]   ;;  %s511_s5 = inlined_call_operand.vmem [shape: f32[8,128], index: 5, kind: output, shape index: {}]  }
   0x1   :  { %11 = vsyncpa [#allocation5], 0  ;;  %s434_s18 = smov [#allocation2]   ;;  %s386_s22 = scalar_lea.hbm %s507_s1, 1024 }
   0x2   :  { %s19_s19 = sshll.u32 %s434_s18, 4  ;;  %p387_p0 = scmp.ne.s32.totalorder %s507_s1, %s386_s22  ;;  %s20_s19 = int_to_ptr.vmem [resolvable:$true] %s19_s19 }
   0x3   :  { %p390_p1 = scmp.lt.u32.totalorder %s386_s22, %s507_s1 }
   0x5   :  { %p392_p2 = pnand %p390_p1, %p387_p0 }
   0x7   :  { %395 = shalt.err (!%p392_p2)
}
   0x8   :  { %s396_s27 = scalar_lea.vmem %s20_s19, 1024  ;;  %p401_p4 = scmp.lt.s32.totalorder %s20_s19, %s20_s19 }
   0x9   :  { %p397_p3 = scmp.ne.s32.totalorder %s20_s19, %s396_s27  ;;  %p402_p5 = scmp.lt.s32.totalorder %s396_s27, %s396_s27 }
   0xb   :  { %p403_p6 = por %p402_p5, %p401_p4 }
   0xd   :  { %p404_p7 = pnand %p403_p6, %p397_p3 }
   0xf   :  { %407 = shalt.err (!%p404_p7)
}
  0x10   :  { %s435_s28 = smov 64   ;;  %s436_s29 = smov 4  }
  0x11   :  { %25 = dma.hbm_to_vmem [thread:$0]  %s507_s1, 1024, %s20_s19, [#allocation3], %s435_s28, %s435_s28, %s436_s29  }
  0x12   :  { %s437_s7 = smov [#allocation4]   ;;  %s408_s11 = scalar_lea.hbm %s509_s3, 1024 }
  0x13   :  { %s33_s8 = sshll.u32 %s437_s7, 4  ;;  %p409_p8 = scmp.ne.s32.totalorder %s509_s3, %s408_s11  ;;  %s34_s8 = int_to_ptr.vmem [resolvable:$true] %s33_s8 }
  0x14   :  { %p412_p9 = scmp.lt.u32.totalorder %s408_s11, %s509_s3 }
  0x16   :  { %p414_p10 = pnand %p412_p9, %p409_p8 }
  0x18   :  { %417 = shalt.err (!%p414_p10)
}
  0x19   :  { %s418_s16 = scalar_lea.vmem %s34_s8, 1024  ;;  %p423_p12 = scmp.lt.s32.totalorder %s34_s8, %s34_s8 }
  0x1a   :  { %p419_p11 = scmp.ne.s32.totalorder %s34_s8, %s418_s16  ;;  %p424_p13 = scmp.lt.s32.totalorder %s418_s16, %s418_s16 }
  0x1c   :  { %p425_p0 = por %p424_p13, %p423_p12 }
  0x1e   :  { %p426_p1 = pnand %p425_p0, %p419_p11 }
  0x20   :  { %429 = shalt.err (!%p426_p1)
}
  0x21   :  { %39 = dma.hbm_to_vmem [thread:$0]  %s509_s3, 1024, %s34_s8, [#allocation5], %s435_s28, %s435_s28, %s436_s29  }
  0x22   :  { %430 = dma.done.wait [#allocation3], 1024  }
  0x23   :  { %431 = vsyncadd [#allocation3], 4294966272 }
  0x24   :  { %432 = dma.done.wait [#allocation5], 1024  }
  0x25   :  { %433 = vsyncadd [#allocation5], 4294966272  ;;  %v438_v0 = vmov 0.0   ;;  %vm439_vm0 = vmmov 0   ;;  %v368_v1 = vld [vmem:[#allocation2] sm:$0xff]   ;;  %v369_v2 = vld [vmem:[#allocation2 + $0x8] sm:$0xff]  }
  0x26   :  { %322 = vmatprep.subr.bf16.mxu0 %v438_v0  ;;  %338 = vmatprep.mubr.msk.bf16.mxu0 %vm439_vm0, %v438_v0  ;;  %v370_v3 = vld [vmem:[#allocation2 + $0x10] sm:$0xff]   ;;  %v376_v4 = vld [vmem:[#allocation4] sm:$0xff]   ;;  %v371_v5 = vld [vmem:[#allocation2 + $0x18] sm:$0xff]  }
  0x27   :  { %342 = vmatprep.subr.bf16.mxu1 %v438_v0  ;;  %358 = vmatprep.mubr.msk.bf16.mxu1 %vm439_vm0, %v438_v0  ;;  %v377_v6 = vld [vmem:[#allocation4 + $0x8] sm:$0xff]   ;;  %v372_v7 = vld [vmem:[#allocation2 + $0x20] sm:$0xff]   ;;  %v378_v8 = vld [vmem:[#allocation4 + $0x10] sm:$0xff]  }
  0x28   :  { %323 = vmatpush3.bf16.msra.mxu0 %v368_v1  ;;  %343 = vmatpush3.bf16.msra.mxu1 %v376_v4  ;;  %v373_v9 = vld [vmem:[#allocation2 + $0x28] sm:$0xff]   ;;  %v374_v10 = vld [vmem:[#allocation2 + $0x30] sm:$0xff]   ;;  %v375_v11 = vld [vmem:[#allocation2 + $0x38] sm:$0xff]  }
  0x29   :  { %324 = vmatprep.subr.bf16.mxu0 %v438_v0  ;;  %344 = vmatprep.subr.bf16.mxu1 %v438_v0  ;;  %v49_v12 = vld [vmem:[%s506_s0] sm:$0xff]  ;;  %v379_v14 = vld [vmem:[#allocation4 + $0x18] sm:$0xff]   ;;  %v381_v16 = vld [vmem:[#allocation4 + $0x28] sm:$0xff]  }
  0x2a   :  { %v50_v13 = vpack.c.bf16 %v49_v12, %v49_v12  ;;  %v380_v15 = vld [vmem:[#allocation4 + $0x20] sm:$0xff]   ;;  %v382_v17 = vld [vmem:[#allocation4 + $0x30] sm:$0xff]   ;;  %v383_v18 = vld [vmem:[#allocation4 + $0x38] sm:$0xff]  }
  0x2b   :  { %v286_v19 = vld [vmem:[%s508_s2] ss:$0 sm:$0xff] }
  0x2c   :  { %325 = vmatpush3.bf16.msra.mxu0 %v369_v2  ;;  %345 = vmatpush3.bf16.msra.mxu1 %v377_v6  ;;  %v295_v31 = vld [vmem:[%s510_s4] ss:$0 sm:$0xff] }
  0x2d   :  { %326 = vmatprep.subr.bf16.mxu0 %v438_v0  ;;  %346 = vmatprep.subr.bf16.mxu1 %v438_v0 }
  0x30   :  { %327 = vmatpush3.bf16.msra.mxu0 %v370_v3  ;;  %347 = vmatpush3.bf16.msra.mxu1 %v378_v8 }
  0x31   :  { %328 = vmatprep.subr.bf16.mxu0 %v438_v0  ;;  %348 = vmatprep.subr.bf16.mxu1 %v438_v0 }
  0x34   :  { %329 = vmatpush3.bf16.msra.mxu0 %v371_v5  ;;  %349 = vmatpush3.bf16.msra.mxu1 %v379_v14 }
  0x35   :  { %330 = vmatprep.subr.bf16.mxu0 %v438_v0  ;;  %350 = vmatprep.subr.bf16.mxu1 %v438_v0 }
  0x38   :  { %331 = vmatpush3.bf16.msra.mxu0 %v372_v7  ;;  %351 = vmatpush3.bf16.msra.mxu1 %v380_v15 }
  0x39   :  { %332 = vmatprep.subr.bf16.mxu0 %v438_v0  ;;  %352 = vmatprep.subr.bf16.mxu1 %v438_v0 }
  0x3c   :  { %333 = vmatpush3.bf16.msra.mxu0 %v373_v9  ;;  %353 = vmatpush3.bf16.msra.mxu1 %v381_v16 }
  0x3d   :  { %334 = vmatprep.subr.bf16.mxu0 %v438_v0  ;;  %354 = vmatprep.subr.bf16.mxu1 %v438_v0 }
  0x40   :  { %335 = vmatpush3.bf16.msra.mxu0 %v374_v10  ;;  %355 = vmatpush3.bf16.msra.mxu1 %v382_v17 }
  0x41   :  { %336 = vmatprep.subr.bf16.mxu0 %v438_v0  ;;  %356 = vmatprep.subr.bf16.mxu1 %v438_v0 }
  0x44   :  { %337 = vmatpush3.bf16.msra.mxu0 %v375_v11  ;;  %357 = vmatpush3.bf16.msra.mxu1 %v383_v18 }
  0x47   :  { %339 = vmatmul.mubr.bf16.vlgmr.msra.gmra.mrb[0].mxu0 %v50_v13 }
 0x11a   :  { %v156_v20 = vpop.f32.mrb[0].mxu0 }
 0x11b   :  { %v157_v21 = vadd.f32 %v286_v19, %v156_v20  ;;  %v340_v22 = vpop.f32.mrb[1].mxu0 }
 0x11c   :  { %v159_v23 = vpop.f32.mrb[2].mxu0 }
 0x11d   :  { %v163_v24 = vmul.f32 0.70710677, %v157_v21  ;;  %v341_v25 = vpop.f32.mrb[3].mxu0  ;;  %v162_v27 = vmul.f32 0.5, %v157_v21 }
 0x11f   :  { %384 = verf.f32 %v163_v24 }
 0x129   :  { %v385_v26 = vpop.eup %384 }
 0x12a   :  { %v165_v28 = vadd.f32 1.0, %v385_v26 }
 0x12c   :  { %v166_v29 = vmul.f32 %v165_v28, %v162_v27 }
 0x12e   :  { %v167_v30 = vpack.c.bf16 %v166_v29, %v166_v29 }
 0x130   :  { %359 = vmatmul.mubr.bf16.vlgmr.msra.gmra.mrb[0].mxu1 %v167_v30 }
 0x203   :  { %v273_v32 = vpop.f32.mrb[0].mxu1 }
 0x204   :  { %v274_v33 = vadd.f32 %v295_v31, %v273_v32  ;;  %v360_v34 = vpop.f32.mrb[1].mxu1 }
 0x205   :  { %v276_v35 = vpop.f32.mrb[2].mxu1 }
 0x206   :  { %279 = vst [vmem:[%s511_s5] sm:$0xff] %v274_v33  ;;  %v361_v36 = vpop.f32.mrb[3].mxu1 }
 0x207   :  { %284 = vsyncpa [#allocation3], 1 }
 0x208   :  { %285 = vsyncpa [#allocation5], 1 }

</bundles_post_ra>
